<compile_context>
chip_gen: v6e
topology: v6e:2x2x1
jax: 0.10.0
libtpu: 0.0.40
codegen_flags: <defaults>
</compile_context>

<pallas_src>
import jax
import jax.numpy as jnp
from jax.experimental import pallas as pl
from jax.experimental.pallas import tpu as pltpu

# Small, module-consistent shapes.
B, C, H, W = 2, 4, 16, 16
BRANCH_DIM = 1000          # each ResNet50-like branch outputs 1000 logits
CAT_DIM = 2 * BRANCH_DIM   # fc = nn.Linear(2000, 2)
OUT_DIM = 2
LANE = 128                 # pad the 2-wide output axis to one full lane group
TB_CAP = 512               # batch-block cap sized for v7x's 64 MiB VMEM
                           # (2 pipeline bufs * TB * 2C * HW * 4 B per block)


def final_model_kernel(x_ref, w_ref, b_ref, o_ref):
    # Merged-branch GAP: (TB, 2C, HW) -> one 256-lane XLU reduce -> (TB, 2C).
    # The 1/(H*W) scale is folded into w_ref, so this is a bare sum.
    p = jnp.sum(x_ref[...], axis=-1)
    # Folded head: equivalent to cat(f1, f2) @ Wfc.T + b.  Output axis is
    # zero-padded to 128 lanes so the store is a full-lane unmasked vst.
    y = jnp.dot(p, w_ref[...], preferred_element_type=jnp.float32) + b_ref[...]
    o_ref[...] = y.astype(o_ref.dtype)


def fold_params(w1, w2, wfc, bfc, hw):
    """One-time parameter prep (call once, outside the per-inference path).

    w1, w2: (C, 1000) branch weights in (in, out) layout.
    wfc:    (2, 2000) PyTorch fc weight.  bfc: (2,) fc bias.  hw: H*W.
    Returns a stacked (2C, LANE) effective weight with the 1/(H*W) GAP scale
    folded in, and a (1, LANE) bias.  Columns [OUT_DIM:LANE] are exactly zero
    so the padded output lanes stay zero.
    """
    assert OUT_DIM <= LANE
    wfc_t = wfc.T                                              # (2000, 2)
    weff = jnp.concatenate(
        (w1 @ wfc_t[:BRANCH_DIM], w2 @ wfc_t[BRANCH_DIM:]), axis=0)  # (2C, 2)
    weff = weff * (1.0 / hw)                                   # fold GAP scale
    c2 = weff.shape[0]
    wp = jnp.zeros((c2, LANE), jnp.float32).at[:, :OUT_DIM].set(weff)
    bp = jnp.zeros((1, LANE), jnp.float32).at[0, :OUT_DIM].set(bfc)
    return wp, bp


def _pick_tb(b):
    # Whole batch in one block when small; otherwise stream 8-aligned blocks
    # capped so two double-buffered input blocks fit v7x's 64 MiB VMEM.
    if b <= TB_CAP:
        return b
    return (TB_CAP // 8) * 8


def final_model(x1, x2, wp, bp):
    """x1, x2: (B, C, H, W) float32 NCHW.  wp/bp from fold_params()."""
    b, c, h, w = x1.shape
    hw = h * w
    c2 = 2 * c
    # Merge the two branches into one lane-dense (B, 2C, HW) stream: the
    # sublane dim becomes 2C (= 8 here) and the reduce axis is the 256-wide
    # lane axis (contiguous reshapes + one concat, no per-call transposes).
    x = jnp.concatenate((x1.reshape(b, c, hw), x2.reshape(b, c, hw)), axis=1)

    tb = _pick_tb(b)
    out_padded = pl.pallas_call(
        final_model_kernel,
        out_shape=jax.ShapeDtypeStruct((b, LANE), jnp.float32),
        grid=(pl.cdiv(b, tb),),
        in_specs=[
            pl.BlockSpec((tb, c2, hw), lambda i: (i, 0, 0)),
            pl.BlockSpec((c2, LANE), lambda i: (0, 0)),
            pl.BlockSpec((1, LANE), lambda i: (0, 0)),
        ],
        out_specs=pl.BlockSpec((tb, LANE), lambda i: (i, 0)),
        compiler_params=pltpu.CompilerParams(
            dimension_semantics=("parallel",)),   # v7x: shard batch over 2 TCs
    )(x, wp, bp)
    # TODO(synk): if the consumer tolerates a 128-wide zero-padded logits
    #             buffer, drop this slice (it is a separate XLA dispatch).
    return out_padded[:, :OUT_DIM]


def final_model_ref(x1, x2, w1, w2, wfc, bfc):
    """Pure-JAX reference mirroring the (un-folded) PyTorch forward semantics."""
    f1 = jnp.mean(x1, axis=(2, 3)) @ w1
    f2 = jnp.mean(x2, axis=(2, 3)) @ w2
    x = jnp.concatenate((f1, f2), axis=1)                 # (B, 2000)
    return x @ wfc.T + bfc                                # (B, 2)


if __name__ == "__main__":
    key = jax.random.PRNGKey(0)
    k_x1, k_x2, k_w1, k_w2, k_wfc, k_b = jax.random.split(key, 6)

    x1 = jax.random.normal(k_x1, (B, C, H, W), dtype=jnp.float32)
    x2 = jax.random.normal(k_x2, (B, C, H, W), dtype=jnp.float32)

    # Deterministic parameter init (synthetic; shapes follow the module).
    w1 = jax.random.normal(k_w1, (C, BRANCH_DIM), dtype=jnp.float32) * 0.05
    w2 = jax.random.normal(k_w2, (C, BRANCH_DIM), dtype=jnp.float32) * 0.05
    wfc = jax.random.normal(k_wfc, (OUT_DIM, CAT_DIM), dtype=jnp.float32) * 0.02
    bfc = jax.random.normal(k_b, (OUT_DIM,), dtype=jnp.float32) * 0.01

    # One-time fold of branch Linear(C->1000), fc(2000->2) and 1/(H*W).
    wp, bp = fold_params(w1, w2, wfc, bfc, H * W)

    out = jax.block_until_ready(final_model(x1, x2, wp, bp))

    ref = final_model_ref(x1, x2, w1, w2, wfc, bfc)
    assert out.shape == (B, OUT_DIM)
    assert jnp.allclose(out, ref, atol=2e-4, rtol=2e-4)

    print("KERNEL_OK")
</pallas_src>

<mosaic_0001>
module attributes {stable_mosaic.version = 11 : i64} {
  func.func @final_model_kernel(%arg0: i32, %arg1: memref<2x8x256xf32, #tpu.memory_space<vmem>>, %arg2: memref<8x128xf32, #tpu.memory_space<vmem>>, %arg3: memref<1x128xf32, #tpu.memory_space<vmem>>, %arg4: memref<2x128xf32, #tpu.memory_space<vmem>>) attributes {dimension_semantics = [#tpu.dimension_semantics<parallel>], iteration_bounds = array<i64: 1>, scalar_prefetch = 0 : i64, scratch_operands = 0 : i64, tpu.core_type = #tpu.core_type<tc>, window_params = [{transform_indices = @transform_0, window_bounds = array<i64: 2, 8, 256>}, {pipeline_mode = #tpu.pipeline_mode<synchronous>, transform_indices = @transform_1, window_bounds = array<i64: 8, 128>}, {pipeline_mode = #tpu.pipeline_mode<synchronous>, transform_indices = @transform_2, window_bounds = array<i64: 1, 128>}, {transform_indices = @transform_3, window_bounds = array<i64: 2, 128>}]} {
    %c0 = arith.constant 0 : index
    %c0_0 = arith.constant 0 : index
    %c0_1 = arith.constant 0 : index
    %0 = vector.load %arg1[%c0, %c0_0, %c0_1] : memref<2x8x256xf32, #tpu.memory_space<vmem>>, vector<2x8x256xf32>
    %cst = arith.constant dense<0.000000e+00> : vector<2x8xf32>
    %1 = vector.multi_reduction <add>, %0, %cst [2] : vector<2x8x256xf32> to vector<2x8xf32>
    %c0_2 = arith.constant 0 : index
    %c0_3 = arith.constant 0 : index
    %2 = vector.load %arg2[%c0_2, %c0_3] : memref<8x128xf32, #tpu.memory_space<vmem>>, vector<8x128xf32>
    %cst_4 = arith.constant dense<0.000000e+00> : vector<2x128xf32>
    %3 = tpu.matmul %1, %2, %cst_4 {dimension_numbers = #tpu.dot_dimension_numbers<[1], [0], [0], [1], [0, 0, 1, 1], [], []>} : vector<2x8xf32>, vector<8x128xf32>, vector<2x128xf32> -> vector<2x128xf32>
    %c0_5 = arith.constant 0 : index
    %c0_6 = arith.constant 0 : index
    %4 = vector.load %arg3[%c0_5, %c0_6] : memref<1x128xf32, #tpu.memory_space<vmem>>, vector<1x128xf32>
    %5 = vector.broadcast %4 : vector<1x128xf32> to vector<2x128xf32>
    %6 = arith.addf %3, %5 : vector<2x128xf32>
    %c0_7 = arith.constant 0 : index
    %c0_8 = arith.constant 0 : index
    %7 = vector.load %arg4[%c0_7, %c0_8] : memref<2x128xf32, #tpu.memory_space<vmem>>, vector<2x128xf32>
    tpu.vector_store %arg4[%c0_7, %c0_8], %6 {strides = array<i32>} : memref<2x128xf32, #tpu.memory_space<vmem>>, vector<2x128xf32>,
    return
  }
  func.func @transform_0(%arg0: i32) -> (i32, i32, i32) {
    %c0_i32 = arith.constant 0 : i32
    %c0_i32_0 = arith.constant 0 : i32
    %c0_i32_1 = arith.constant 0 : i32
    return %arg0, %c0_i32, %c0_i32_0 : i32, i32, i32
  }
  func.func @transform_1(%arg0: i32) -> (i32, i32) {
    %c0_i32 = arith.constant 0 : i32
    %c0_i32_0 = arith.constant 0 : i32
    %c0_i32_1 = arith.constant 0 : i32
    return %c0_i32, %c0_i32_0 : i32, i32
  }
  func.func @transform_2(%arg0: i32) -> (i32, i32) {
    %c0_i32 = arith.constant 0 : i32
    %c0_i32_0 = arith.constant 0 : i32
    %c0_i32_1 = arith.constant 0 : i32
    return %c0_i32, %c0_i32_0 : i32, i32
  }
  func.func @transform_3(%arg0: i32) -> (i32, i32) {
    %c0_i32 = arith.constant 0 : i32
    %c0_i32_0 = arith.constant 0 : i32
    return %arg0, %c0_i32 : i32, i32
  }
}

</mosaic_0001>

<bundles_post_ra>
// kernel: tpu_custom_call.1
= control target key start
LH: loop header
LB: loop body
LE: loop exit
PB: predicated region body
PF: predicated region fallthrough
CT: control target
= control target key end

     0   :  { %8 = vsyncpa [#allocation3], 0  ;;  %s284_s0 = inlined_call_operand.hbm [shape: f32[2,8,256], index: 0, kind: input, shape index: {}]   ;;  %s285_s1 = inlined_call_operand.hbm [shape: f32[8,128], index: 1, kind: input, shape index: {}]   ;;  %s286_s2 = inlined_call_operand.vmem [shape: f32[1,128], index: 2, kind: input, shape index: {}]   ;;  %s287_s3 = inlined_call_operand.hbm [shape: f32[2,128], index: 3, kind: output, shape index: {}]  }
   0x1   :  { %9 = vsyncpa [#allocation6], 0 }
   0x2   :  { %10 = vsyncpa [#allocation4], 0  ;;  %s245_s12 = smov [#allocation2]  }
   0x3   :  { %s16_s13 = sshll.u32 %s245_s12, 4  ;;  %s17_s13 = int_to_ptr.vmem [resolvable:$true] %s16_s13 }
   0x4   :  { %s187_s14 = scalar_lea.vmem %s17_s13, 512  ;;  %p192_p1 = scmp.lt.s32.totalorder %s17_s13, %s17_s13 }
   0x5   :  { %p188_p0 = scmp.ne.s32.totalorder %s17_s13, %s187_s14  ;;  %p193_p2 = scmp.lt.s32.totalorder %s187_s14, %s187_s14 }
   0x7   :  { %p194_p3 = por %p193_p2, %p192_p1 }
   0x9   :  { %p195_p4 = pnand %p194_p3, %p188_p0 }
   0xb   :  { %198 = shalt.err (!%p195_p4)
}
   0xc   :  { %s246_s15 = smov 256   ;;  %s247_s16 = smov 16  }
   0xd   :  { %22 = dma.hbm_to_vmem [thread:$0]  %s284_s0, 512, %s17_s13, [#allocation3], %s246_s15, %s246_s15, %s247_s16  }
   0xe   :  { %s248_s19 = smov [#allocation5]  }
   0xf   :  { %s29_s20 = sshll.u32 %s248_s19, 4  ;;  %s30_s20 = int_to_ptr.vmem [resolvable:$true] %s29_s20 }
  0x10   :  { %s207_s21 = scalar_lea.vmem %s30_s20, 128  ;;  %p212_p6 = scmp.lt.s32.totalorder %s30_s20, %s30_s20 }
  0x11   :  { %p208_p5 = scmp.ne.s32.totalorder %s30_s20, %s207_s21  ;;  %p213_p7 = scmp.lt.s32.totalorder %s207_s21, %s207_s21 }
  0x13   :  { %p214_p8 = por %p213_p7, %p212_p6 }
  0x15   :  { %p215_p9 = pnand %p214_p8, %p208_p5 }
  0x17   :  { %218 = shalt.err (!%p215_p9)
}
  0x18   :  { %32 = dma.hbm_to_vmem [thread:$0]  %s285_s1, 128, %s30_s20, [#allocation6]  }
  0x19   :  { %239 = dma.done.wait [#allocation3], 512  }
  0x1a   :  { %240 = vsyncadd [#allocation3], 4294966784 }
  0x1b   :  { %241 = dma.done.wait [#allocation6], 128  }
  0x1c   :  { %242 = vsyncadd [#allocation6], 4294967168  ;;  %v41_v0 = vld [vmem:[#allocation2] sm:$0xff]  ;;  %v42_v1 = vld [vmem:[#allocation2 + $0x8] sm:$0xff]  ;;  %v249_v7 = vmov 0.0   ;;  %vm250_vm0 = vmmov 0   ;;  %v61_v8 = vlaneseq }
  0x1d   :  { %v43_v2 = vld [vmem:[#allocation2 + $0x10] sm:$0xff]  ;;  %v45_v3 = vadd.f32 %v42_v1, %v41_v0  ;;  %v44_v4 = vld [vmem:[#allocation2 + $0x18] sm:$0xff]  ;;  %v51_v6 = vld [vmem:[#allocation5] sm:$0xff]  ;;  %167 = vmatprep.subr.mxu0 %v249_v7  ;;  %169 = vmatprep.mubr.msk.f32.mxu0 %vm250_vm0, %v249_v7  ;;  %vm71_vm1 = vcmask 1041409   ;;  %vm73_vm2 = vcmask 64512   ;;  %s251_s24 = smov [#allocation7]  }
  0x1e   :  { %v48_v5 = vadd.f32 %v44_v4, %v43_v2  ;;  %168 = vmatpush3.msra.mxu0 %v51_v6  ;;  %v62_v9 = vand.u32 127, %v61_v8  ;;  %v64_v10 = vshrl.u32 %v61_v8, 7  ;;  %v163_v17 = vld [vmem:[%s286_s2] ss:$0 sm:$0xff]  ;;  %s153_s25 = sshll.u32 %s251_s24, 4  ;;  %s154_s25 = int_to_ptr.vmem [resolvable:$true] %s153_s25 }
  0x1f   :  { %46 = vadd.xlane.f32.xlu0 %v45_v3  ;;  %s219_s26 = scalar_lea.vmem %s154_s25, 32  ;;  %p224_p11 = scmp.lt.s32.totalorder %s154_s25, %s154_s25 }
  0x20   :  { %v65_v12 = vsub.s32 %v62_v9, %v64_v10  ;;  %p220_p10 = scmp.ne.s32.totalorder %s154_s25, %s219_s26  ;;  %p225_p12 = scmp.lt.s32.totalorder %s219_s26, %s219_s26 }
  0x22   :  { %p226_p13 = por %p225_p12, %p224_p11 }
  0x23   :  { %49 = vadd.xlane.f32.xlu0 %v48_v5 }
  0x24   :  { %p227_p0 = pnand %p226_p13, %p220_p10 }
  0xa8   :  { %v47_v11 = vpop.xlane.xlu0 %46 }
  0xa9   :  { %v66_v14 = vrot.slane %v47_v11, %v65_v12 }
  0xac   :  { %v50_v13 = vpop.xlane.xlu0 %49 }
  0xad   :  { %v70_v15 = vrot.slane %v50_v13, %v65_v12 }
  0xaf   :  { %v72_v16 = vsel %vm71_vm1, %v70_v15, %v66_v14 }
  0xb0   :  { %170 = vmatmul.mubr.msk.f32.vlgmr.msra.gmra.mxu0 %vm73_vm2, %v72_v16 }
 0x170   :  { %v142_v18 = vpop.f32.mrf.mxu0 }
 0x171   :  { %v143_v19 = vadd.f32 %v163_v17, %v142_v18 }
 0x172   :  { %v171_v20 = vpop.f32.mrf.mxu0 }
 0x173   :  { %146 = vst [vmem:[#allocation7] sm:$0x3] %v143_v19 }
 0x174   :  { %230 = shalt.err (!%p227_p0)
}
 0x175   :  { %156 = dma.vmem_to_hbm [thread:$0]  %s154_s25, 32, %s287_s3, [#allocation4]  }
 0x176   :  { %243 = dma.done.wait [#allocation4], 32  }
 0x177   :  { %244 = vsyncadd [#allocation4], 4294967264 }
 0x178   :  { %160 = vsyncpa [#allocation3], 1 }
 0x179   :  { %161 = vsyncpa [#allocation6], 1 }
 0x17a   :  { %162 = vsyncpa [#allocation4], 1 }

</bundles_post_ra>
